<compile_context>
chip_gen: v5e
topology: v5e:2x2
jax: 0.10.0
libtpu: 0.0.40
codegen_flags: <defaults>
</compile_context>

<pallas_src>
import functools

import jax
import jax.numpy as jnp
import numpy as np
from jax.experimental import pallas as pl
from jax.experimental.pallas import tpu as pltpu


def _keypoint_head_kernel(x_ref, w1_ref, b1_ref, w2_ref, b2_ref, w3_ref, b3_ref,
                          o_ref, pad_ref, im2col_ref, h2t_ref, *, H, W, PADL):
    """Fused Conv3x3+ReLU -> Deconv2x2+ReLU -> Deconv2x2 for one image.

    x_ref     : (1, C, HW)          bf16  channel-major activations (lanes = H*W)
    w1_ref    : (C, 9C)             bf16  conv weight, cols = (kh*3+kw)*C + cin
    b1_ref    : (C, 1)              f32
    w2_ref    : (4, C, C)           bf16  deconv1 weight, [kh1*2+kw1, cout, cin]
    b2_ref    : (C, 1)              f32
    w3_ref    : (4K, C)             bf16  deconv2 weight, rows = (kh2*2+kw2)*K + k
    b3_ref    : (4K, 1)             f32
    o_ref     : (1, 4K, 4*HW)       bf16  packed: [(kh2,kw2,k), (kh1,kw1, i*W+j)]
    pad_ref   : (C, 2*PADL+HW)      bf16  zero-halo copy of x, interior at lane PADL
    im2col_ref: (9C, HW)            bf16  9 shifted/masked taps stacked on sublanes
    h2t_ref   : (C, 4*HW)           bf16  deconv1 output, 4 lane-contiguous slabs
    """
    C = x_ref.shape[1]
    HW = H * W

    # Zero ONLY the halo lanes the 3x3 taps actually read (W+1 on each side).
    # Done every step (tiny, ~2*(W+1)*C stores) — NOT under pl.when(step==0),
    # since a "parallel" grid axis splits steps across TensorCores and the second
    # core would never see step 0 for its own persistent scratch.
    pad_ref[:, PADL - W - 1:PADL] = jnp.zeros((C, W + 1), jnp.bfloat16)
    pad_ref[:, PADL + HW:PADL + HW + W + 1] = jnp.zeros((C, W + 1), jnp.bfloat16)
    # 128-lane-aligned interior store (interior is fully overwritten each step).
    pad_ref[:, PADL:PADL + HW] = x_ref[0]

    # Column-validity masks, generated in-kernel.  Only the kw != 1 taps need them
    # (vertical out-of-image rows are already zeros in the halo).
    col = jax.lax.broadcasted_iota(jnp.int32, (1, HW), 1) % W
    not_left = (col != 0).astype(jnp.bfloat16)          # tap invalid when j == 0
    not_right = (col != W - 1).astype(jnp.bfloat16)     # tap invalid when j == W-1

    # im2col: each 3x3 tap is a plain static lane slice of the halo'd image; the
    # mask multiply is fused into the copy into the (9C, HW) scratch.
    for kh in range(3):
        for kw in range(3):
            t = kh * 3 + kw
            off = PADL + (kh - 1) * W + (kw - 1)
            xs = pad_ref[:, off:off + HW]
            if kw == 0:
                xs = xs * not_left
            elif kw == 2:
                xs = xs * not_right
            im2col_ref[t * C:(t + 1) * C, :] = xs

    # Conv2d 3x3 (pad=1) + ReLU as ONE matmul: (C, 9C) @ (9C, HW), f32 accumulate
    # entirely inside the MXU (MRF on v5e/v6e, in-place MRB on v7x).
    h1 = jnp.dot(w1_ref[...], im2col_ref[...], preferred_element_type=jnp.float32)
    h1 = jnp.maximum(h1 + b1_ref[...], 0.0).astype(jnp.bfloat16)            # (C, HW)

    # ConvTranspose2d 2x2 s2 + ReLU: k=2,s=2 is per-input-pixel, so each sub-pixel
    # (kh1, kw1) is an independent (C,C) @ (C,HW) matmul.  Bias+ReLU+bf16 cast is
    # applied once per slab and the result lands directly in a lane-contiguous
    # slab of the (C, 4*HW) scratch.
    for g1 in range(4):
        z = jnp.dot(w2_ref[g1], h1, preferred_element_type=jnp.float32)     # (C, HW)
        h2t_ref[:, g1 * HW:(g1 + 1) * HW] = (
            jnp.maximum(z + b2_ref[...], 0.0).astype(jnp.bfloat16))

    # ConvTranspose2d 2x2 s2 (no ReLU): ONE wide matmul over all 4 slabs at once,
    # followed by a single lane-dense bf16 store of the packed output.
    y = jnp.dot(w3_ref[...], h2t_ref[...], preferred_element_type=jnp.float32)  # (4K, 4HW)
    o_ref[0] = (y + b3_ref[...]).astype(jnp.bfloat16)


@jax.jit
def keypoint_head_forward(x_nchw, w1, b1, w2, b2, w3, b3):
    """x: (N, C, H, W) f32; weights in (kh, kw, Cin, Cout) layout (see __main__)."""
    N, C, H, W = x_nchw.shape
    HW = H * W
    K = w3.shape[-1]
    PADL = ((W + 1 + 127) // 128) * 128      # aligned interior; halo >= W+1 lanes

    # Channel-major flat activations: NCHW -> (N, C, H*W) is a free reshape.
    # (For production HW such as 14*14=196, additionally pad HW up to a multiple
    #  of 128 here so every tap load / output store stays lane-dense.)
    x_cm = x_nchw.reshape(N, C, HW).astype(jnp.bfloat16)

    # Weights packed for the kernel's matmul layouts (bf16 MXU operands, f32 bias).
    w1_k = jnp.transpose(w1, (3, 0, 1, 2)).reshape(C, 9 * C).astype(jnp.bfloat16)   # (Cout, 9*Cin)
    w2_k = jnp.transpose(w2, (0, 1, 3, 2)).reshape(4, C, C).astype(jnp.bfloat16)    # (g1, Cout, Cin)
    w3_k = jnp.transpose(w3, (0, 1, 3, 2)).reshape(4 * K, C).astype(jnp.bfloat16)   # (g2*K+k, Cin)
    b1_k = b1.reshape(C, 1).astype(jnp.float32)
    b2_k = b2.reshape(C, 1).astype(jnp.float32)
    b3_k = jnp.tile(b3, 4).reshape(4 * K, 1).astype(jnp.float32)

    flops = 2 * N * HW * C * (13 * C + 16 * K)
    bytes_accessed = (x_cm.size * 2 + w1_k.size * 2 + w2_k.size * 2 + w3_k.size * 2
                      + (b1_k.size + b2_k.size + b3_k.size) * 4
                      + N * 4 * K * 4 * HW * 2)

    out_packed = pl.pallas_call(
        functools.partial(_keypoint_head_kernel, H=H, W=W, PADL=PADL),
        out_shape=jax.ShapeDtypeStruct((N, 4 * K, 4 * HW), jnp.bfloat16),
        grid=(N,),
        in_specs=[
            pl.BlockSpec((1, C, HW), lambda n: (n, 0, 0)),
            # NOTE: at production C (>=128) these constant-index weight specs
            # should be single-buffered (pipeline_mode=pl.Buffered(1)) to free
            # VMEM headroom; left default here for the small functional test.
            pl.BlockSpec((C, 9 * C), lambda n: (0, 0)),
            pl.BlockSpec((C, 1), lambda n: (0, 0)),
            pl.BlockSpec((4, C, C), lambda n: (0, 0, 0)),
            pl.BlockSpec((C, 1), lambda n: (0, 0)),
            pl.BlockSpec((4 * K, C), lambda n: (0, 0)),
            pl.BlockSpec((4 * K, 1), lambda n: (0, 0)),
        ],
        out_specs=pl.BlockSpec((1, 4 * K, 4 * HW), lambda n: (n, 0, 0)),
        scratch_shapes=[
            pltpu.VMEM((C, 2 * PADL + HW), jnp.bfloat16),   # zero-halo image
            pltpu.VMEM((9 * C, HW), jnp.bfloat16),          # im2col taps
            pltpu.VMEM((C, 4 * HW), jnp.bfloat16),          # deconv1 sub-pixel slabs
        ],
        compiler_params=pltpu.CompilerParams(
            dimension_semantics=("parallel",),      # one image per TC on v7x (N>=2)
            vmem_limit_bytes=48 * 1024 * 1024),     # v5e's 16 MiB scoped default is too
                                                    # small at production C; 48 MiB still
                                                    # fits v7x's 64 MiB physical VMEM.
        cost_estimate=pl.CostEstimate(flops=flops, transcendentals=0,
                                      bytes_accessed=bytes_accessed),
    )(x_cm, w1_k, b1_k, w2_k, b2_k, w3_k, b3_k)

    # Single sub-pixel interleave, done on bf16 (half the bytes of an f32 pass),
    # one cast back to f32 after it.
    #   packed[n, (kh2*2+kw2)*K + k, (kh1*2+kw1)*HW + i*W + j]
    #     == out[n, k, 4i + 2*kh1 + kh2, 4j + 2*kw1 + kw2]
    y = out_packed.reshape(N, 2, 2, K, 2, 2, H, W)      # (n,kh2,kw2,k,kh1,kw1,i,j)
    y = y.transpose(0, 3, 6, 4, 1, 7, 5, 2)             # (n,k,i,kh1,kh2,j,kw1,kw2)
    return y.reshape(N, K, 4 * H, 4 * W).astype(jnp.float32)


if __name__ == "__main__":
    N, C, H, W = 2, 4, 16, 16
    K = 8  # num_keypoints

    key = jax.random.PRNGKey(0)
    ks = jax.random.split(key, 7)
    x_nchw = jax.random.normal(ks[0], (N, C, H, W), dtype=jnp.float32)

    # Synthetic parameters in (kh, kw, Cin, Cout) layout — same math as PyTorch's
    # Conv2d (Cout,Cin,kh,kw) / ConvTranspose2d (Cin,Cout,kh,kw) after transposition.
    w1 = jax.random.normal(ks[1], (3, 3, C, C), dtype=jnp.float32) * 0.1
    b1 = jax.random.normal(ks[2], (C,), dtype=jnp.float32) * 0.1
    w2 = jax.random.normal(ks[3], (2, 2, C, C), dtype=jnp.float32) * 0.1
    b2 = jax.random.normal(ks[4], (C,), dtype=jnp.float32) * 0.1
    w3 = jax.random.normal(ks[5], (2, 2, C, K), dtype=jnp.float32) * 0.1
    b3 = jax.random.normal(ks[6], (K,), dtype=jnp.float32) * 0.1

    out = keypoint_head_forward(x_nchw, w1, b1, w2, b2, w3, b3)
    out = jax.block_until_ready(out)
    assert out.shape == (N, K, 4 * H, 4 * W), out.shape

    # Plain-JAX f32 reference (same math as the PyTorch module).
    xr = jnp.transpose(x_nchw, (0, 2, 3, 1))
    r = jax.lax.conv_general_dilated(
        xr, w1, window_strides=(1, 1), padding="SAME",
        dimension_numbers=("NHWC", "HWIO", "NHWC")) + b1
    r = jnp.maximum(r, 0.0)

    def deconv_ref(xx, ww, bb):
        n_, h_, w_, _ = xx.shape
        co = ww.shape[-1]
        y = jnp.einsum("nhwc,ijco->nhwijo", xx, ww)
        y = y.transpose(0, 1, 3, 2, 4, 5).reshape(n_, 2 * h_, 2 * w_, co)
        return y + bb

    r = jnp.maximum(deconv_ref(r, w2, b2), 0.0)
    r = deconv_ref(r, w3, b3)
    r = jnp.transpose(r, (0, 3, 1, 2))

    # bf16 MXU operands / bf16 packed output with f32 accumulation -> bf16 tolerance.
    np.testing.assert_allclose(np.asarray(out), np.asarray(r), rtol=2e-2, atol=2e-2)
    print("KERNEL_OK")
</pallas_src>

<mosaic_0001>
module attributes {stable_mosaic.version = 11 : i64} {
  func.func @_keypoint_head_kernel(%arg0: i32, %arg1: memref<1x4x256xbf16, #tpu.memory_space<vmem>>, %arg2: memref<4x36xbf16, #tpu.memory_space<vmem>>, %arg3: memref<4x1xf32, #tpu.memory_space<vmem>>, %arg4: memref<4x4x4xbf16, #tpu.memory_space<vmem>>, %arg5: memref<4x1xf32, #tpu.memory_space<vmem>>, %arg6: memref<32x4xbf16, #tpu.memory_space<vmem>>, %arg7: memref<32x1xf32, #tpu.memory_space<vmem>>, %arg8: memref<1x32x1024xbf16, #tpu.memory_space<vmem>>, %arg9: memref<4x512xbf16, #tpu.memory_space<vmem>>, %arg10: memref<36x256xbf16, #tpu.memory_space<vmem>>, %arg11: memref<4x1024xbf16, #tpu.memory_space<vmem>>) attributes {dimension_semantics = [#tpu.dimension_semantics<parallel>], iteration_bounds = array<i64: 2>, scalar_prefetch = 0 : i64, scratch_operands = 3 : i64, tpu.core_type = #tpu.core_type<tc>, window_params = [{transform_indices = @transform_0, window_bounds = array<i64: 1, 4, 256>}, {pipeline_mode = #tpu.pipeline_mode<synchronous>, transform_indices = @transform_1, window_bounds = array<i64: 4, 36>}, {pipeline_mode = #tpu.pipeline_mode<synchronous>, transform_indices = @transform_2, window_bounds = array<i64: 4, 1>}, {pipeline_mode = #tpu.pipeline_mode<synchronous>, transform_indices = @transform_3, window_bounds = array<i64: 4, 4, 4>}, {pipeline_mode = #tpu.pipeline_mode<synchronous>, transform_indices = @transform_4, window_bounds = array<i64: 4, 1>}, {pipeline_mode = #tpu.pipeline_mode<synchronous>, transform_indices = @transform_5, window_bounds = array<i64: 32, 4>}, {pipeline_mode = #tpu.pipeline_mode<synchronous>, transform_indices = @transform_6, window_bounds = array<i64: 32, 1>}, {transform_indices = @transform_7, window_bounds = array<i64: 1, 32, 1024>}]} {
    %cst = arith.constant 0.000000e+00 : bf16
    %0 = vector.broadcast %cst : bf16 to vector<4x17xbf16>
    %c0 = arith.constant 0 : index
    %c111 = arith.constant 111 : index
    %1 = vector.load %arg9[%c0, %c111] : memref<4x512xbf16, #tpu.memory_space<vmem>>, vector<4x17xbf16>
    tpu.vector_store %arg9[%c0, %c111], %0 {strides = array<i32>} : memref<4x512xbf16, #tpu.memory_space<vmem>>, vector<4x17xbf16>,
    %cst_0 = arith.constant 0.000000e+00 : bf16
    %2 = vector.broadcast %cst_0 : bf16 to vector<4x17xbf16>
    %c0_1 = arith.constant 0 : index
    %c384 = arith.constant 384 : index
    %3 = vector.load %arg9[%c0_1, %c384] : memref<4x512xbf16, #tpu.memory_space<vmem>>, vector<4x17xbf16>
    tpu.vector_store %arg9[%c0_1, %c384], %2 {strides = array<i32>} : memref<4x512xbf16, #tpu.memory_space<vmem>>, vector<4x17xbf16>,
    %c0_2 = arith.constant 0 : index
    %c0_3 = arith.constant 0 : index
    %c0_4 = arith.constant 0 : index
    %4 = vector.load %arg1[%c0_2, %c0_3, %c0_4] : memref<1x4x256xbf16, #tpu.memory_space<vmem>>, vector<1x4x256xbf16>
    %5 = vector.shape_cast %4 : vector<1x4x256xbf16> to vector<4x256xbf16>
    %c0_5 = arith.constant 0 : index
    %c128 = arith.constant 128 : index
    %6 = vector.load %arg9[%c0_5, %c128] : memref<4x512xbf16, #tpu.memory_space<vmem>>, vector<4x256xbf16>
    tpu.vector_store %arg9[%c0_5, %c128], %5 {strides = array<i32>} : memref<4x512xbf16, #tpu.memory_space<vmem>>, vector<4x256xbf16>,
    %7 = tpu.iota {dimensions = array<i32: 1>} : vector<1x256xi32>
    %c16_i32 = arith.constant 16 : i32
    %c0_i32 = arith.constant 0 : i32
    %8 = arith.cmpi eq, %c16_i32, %c0_i32 : i32
    %c1_i32 = arith.constant 1 : i32
    %9 = arith.select %8, %c1_i32, %c16_i32 : i32
    %10 = vector.broadcast %9 : i32 to vector<1x256xi32>
    %11 = arith.remsi %7, %10 : vector<1x256xi32>
    %c0_i32_6 = arith.constant 0 : i32
    %12 = vector.broadcast %c0_i32_6 : i32 to vector<1x256xi32>
    %13 = arith.cmpi ne, %11, %12 : vector<1x256xi32>
    %c0_i32_7 = arith.constant 0 : i32
    %14 = vector.broadcast %c0_i32_7 : i32 to vector<1x256xi32>
    %15 = arith.cmpi slt, %11, %14 : vector<1x256xi32>
    %c0_i32_8 = arith.constant 0 : i32
    %16 = arith.cmpi slt, %9, %c0_i32_8 : i32
    %17 = vector.broadcast %16 : i1 to vector<1x256xi1>
    %18 = vector.broadcast %17 : vector<1x256xi1> to vector<1x256xi1>
    %19 = arith.xori %15, %18 : vector<1x256xi1>
    %20 = arith.andi %19, %13 : vector<1x256xi1>
    %21 = vector.broadcast %9 : i32 to vector<1x256xi32>
    %22 = arith.addi %11, %21 : vector<1x256xi32>
    %23 = arith.select %20, %22, %11 : vector<1x256xi1>, vector<1x256xi32>
    %c0_i32_9 = arith.constant 0 : i32
    %24 = vector.broadcast %c0_i32_9 : i32 to vector<1x256xi32>
    %25 = arith.cmpi ne, %23, %24 : vector<1x256xi32>
    %26 = arith.extui %25 : vector<1x256xi1> to vector<1x256xi32>
    %27 = arith.sitofp %26 : vector<1x256xi32> to vector<1x256xf32>
    %28 = arith.truncf %27 : vector<1x256xf32> to vector<1x256xbf16>
    %c15_i32 = arith.constant 15 : i32
    %29 = vector.broadcast %c15_i32 : i32 to vector<1x256xi32>
    %30 = arith.cmpi ne, %23, %29 : vector<1x256xi32>
    %31 = arith.extui %30 : vector<1x256xi1> to vector<1x256xi32>
    %32 = arith.sitofp %31 : vector<1x256xi32> to vector<1x256xf32>
    %33 = arith.truncf %32 : vector<1x256xf32> to vector<1x256xbf16>
    %c0_10 = arith.constant 0 : index
    %c111_11 = arith.constant 111 : index
    %34 = vector.load %arg9[%c0_10, %c111_11] : memref<4x512xbf16, #tpu.memory_space<vmem>>, vector<4x256xbf16>
    %35 = vector.broadcast %28 : vector<1x256xbf16> to vector<4x256xbf16>
    %36 = arith.mulf %34, %35 : vector<4x256xbf16>
    %c0_12 = arith.constant 0 : index
    %c0_13 = arith.constant 0 : index
    %37 = vector.load %arg10[%c0_12, %c0_13] : memref<36x256xbf16, #tpu.memory_space<vmem>>, vector<4x256xbf16>
    tpu.vector_store %arg10[%c0_12, %c0_13], %36 {strides = array<i32>} : memref<36x256xbf16, #tpu.memory_space<vmem>>, vector<4x256xbf16>,
    %c0_14 = arith.constant 0 : index
    %c112 = arith.constant 112 : index
    %38 = vector.load %arg9[%c0_14, %c112] : memref<4x512xbf16, #tpu.memory_space<vmem>>, vector<4x256xbf16>
    %c4 = arith.constant 4 : index
    %c0_15 = arith.constant 0 : index
    %39 = vector.load %arg10[%c4, %c0_15] : memref<36x256xbf16, #tpu.memory_space<vmem>>, vector<4x256xbf16>
    tpu.vector_store %arg10[%c4, %c0_15], %38 {strides = array<i32>} : memref<36x256xbf16, #tpu.memory_space<vmem>>, vector<4x256xbf16>,
    %c0_16 = arith.constant 0 : index
    %c113 = arith.constant 113 : index
    %40 = vector.load %arg9[%c0_16, %c113] : memref<4x512xbf16, #tpu.memory_space<vmem>>, vector<4x256xbf16>
    %41 = vector.broadcast %33 : vector<1x256xbf16> to vector<4x256xbf16>
    %42 = arith.mulf %40, %41 : vector<4x256xbf16>
    %c8 = arith.constant 8 : index
    %c0_17 = arith.constant 0 : index
    %43 = vector.load %arg10[%c8, %c0_17] : memref<36x256xbf16, #tpu.memory_space<vmem>>, vector<4x256xbf16>
    tpu.vector_store %arg10[%c8, %c0_17], %42 {strides = array<i32>} : memref<36x256xbf16, #tpu.memory_space<vmem>>, vector<4x256xbf16>,
    %c0_18 = arith.constant 0 : index
    %c127 = arith.constant 127 : index
    %44 = vector.load %arg9[%c0_18, %c127] : memref<4x512xbf16, #tpu.memory_space<vmem>>, vector<4x256xbf16>
    %45 = vector.broadcast %28 : vector<1x256xbf16> to vector<4x256xbf16>
    %46 = arith.mulf %44, %45 : vector<4x256xbf16>
    %c12 = arith.constant 12 : index
    %c0_19 = arith.constant 0 : index
    %47 = vector.load %arg10[%c12, %c0_19] : memref<36x256xbf16, #tpu.memory_space<vmem>>, vector<4x256xbf16>
    tpu.vector_store %arg10[%c12, %c0_19], %46 {strides = array<i32>} : memref<36x256xbf16, #tpu.memory_space<vmem>>, vector<4x256xbf16>,
    %c0_20 = arith.constant 0 : index
    %c128_21 = arith.constant 128 : index
    %48 = vector.load %arg9[%c0_20, %c128_21] : memref<4x512xbf16, #tpu.memory_space<vmem>>, vector<4x256xbf16>
    %c16 = arith.constant 16 : index
    %c0_22 = arith.constant 0 : index
    %49 = vector.load %arg10[%c16, %c0_22] : memref<36x256xbf16, #tpu.memory_space<vmem>>, vector<4x256xbf16>
    tpu.vector_store %arg10[%c16, %c0_22], %48 {strides = array<i32>} : memref<36x256xbf16, #tpu.memory_space<vmem>>, vector<4x256xbf16>,
    %c0_23 = arith.constant 0 : index
    %c129 = arith.constant 129 : index
    %50 = vector.load %arg9[%c0_23, %c129] : memref<4x512xbf16, #tpu.memory_space<vmem>>, vector<4x256xbf16>
    %51 = vector.broadcast %33 : vector<1x256xbf16> to vector<4x256xbf16>
    %52 = arith.mulf %50, %51 : vector<4x256xbf16>
    %c20 = arith.constant 20 : index
    %c0_24 = arith.constant 0 : index
    %53 = vector.load %arg10[%c20, %c0_24] : memref<36x256xbf16, #tpu.memory_space<vmem>>, vector<4x256xbf16>
    tpu.vector_store %arg10[%c20, %c0_24], %52 {strides = array<i32>} : memref<36x256xbf16, #tpu.memory_space<vmem>>, vector<4x256xbf16>,
    %c0_25 = arith.constant 0 : index
    %c143 = arith.constant 143 : index
    %54 = vector.load %arg9[%c0_25, %c143] : memref<4x512xbf16, #tpu.memory_space<vmem>>, vector<4x256xbf16>
    %55 = vector.broadcast %28 : vector<1x256xbf16> to vector<4x256xbf16>
    %56 = arith.mulf %54, %55 : vector<4x256xbf16>
    %c24 = arith.constant 24 : index
    %c0_26 = arith.constant 0 : index
    %57 = vector.load %arg10[%c24, %c0_26] : memref<36x256xbf16, #tpu.memory_space<vmem>>, vector<4x256xbf16>
    tpu.vector_store %arg10[%c24, %c0_26], %56 {strides = array<i32>} : memref<36x256xbf16, #tpu.memory_space<vmem>>, vector<4x256xbf16>,
    %c0_27 = arith.constant 0 : index
    %c144 = arith.constant 144 : index
    %58 = vector.load %arg9[%c0_27, %c144] : memref<4x512xbf16, #tpu.memory_space<vmem>>, vector<4x256xbf16>
    %c28 = arith.constant 28 : index
    %c0_28 = arith.constant 0 : index
    %59 = vector.load %arg10[%c28, %c0_28] : memref<36x256xbf16, #tpu.memory_space<vmem>>, vector<4x256xbf16>
    tpu.vector_store %arg10[%c28, %c0_28], %58 {strides = array<i32>} : memref<36x256xbf16, #tpu.memory_space<vmem>>, vector<4x256xbf16>,
    %c0_29 = arith.constant 0 : index
    %c145 = arith.constant 145 : index
    %60 = vector.load %arg9[%c0_29, %c145] : memref<4x512xbf16, #tpu.memory_space<vmem>>, vector<4x256xbf16>
    %61 = vector.broadcast %33 : vector<1x256xbf16> to vector<4x256xbf16>
    %62 = arith.mulf %60, %61 : vector<4x256xbf16>
    %c32 = arith.constant 32 : index
    %c0_30 = arith.constant 0 : index
    %63 = vector.load %arg10[%c32, %c0_30] : memref<36x256xbf16, #tpu.memory_space<vmem>>, vector<4x256xbf16>
    tpu.vector_store %arg10[%c32, %c0_30], %62 {strides = array<i32>} : memref<36x256xbf16, #tpu.memory_space<vmem>>, vector<4x256xbf16>,
    %c0_31 = arith.constant 0 : index
    %c0_32 = arith.constant 0 : index
    %64 = vector.load %arg2[%c0_31, %c0_32] : memref<4x36xbf16, #tpu.memory_space<vmem>>, vector<4x36xbf16>
    %c0_33 = arith.constant 0 : index
    %c0_34 = arith.constant 0 : index
    %65 = vector.load %arg10[%c0_33, %c0_34] : memref<36x256xbf16, #tpu.memory_space<vmem>>, vector<36x256xbf16>
    %cst_35 = arith.constant dense<0.000000e+00> : vector<4x256xf32>
    %66 = tpu.matmul %64, %65, %cst_35 {dimension_numbers = #tpu.dot_dimension_numbers<[1], [0], [0], [1], [0, 0, 1, 1], [], []>} : vector<4x36xbf16>, vector<36x256xbf16>, vector<4x256xf32> -> vector<4x256xf32>
    %c0_36 = arith.constant 0 : index
    %c0_37 = arith.constant 0 : index
    %67 = vector.load %arg3[%c0_36, %c0_37] : memref<4x1xf32, #tpu.memory_space<vmem>>, vector<4x1xf32>
    %68 = vector.broadcast %67 : vector<4x1xf32> to vector<4x256xf32>
    %69 = arith.addf %66, %68 : vector<4x256xf32>
    %cst_38 = arith.constant 0.000000e+00 : f32
    %70 = vector.broadcast %cst_38 : f32 to vector<4x256xf32>
    %71 = arith.maximumf %69, %70 : vector<4x256xf32>
    %72 = arith.truncf %71 : vector<4x256xf32> to vector<4x256xbf16>
    %c0_39 = arith.constant 0 : index
    %c0_40 = arith.constant 0 : index
    %c0_41 = arith.constant 0 : index
    %73 = vector.load %arg4[%c0_39, %c0_40, %c0_41] : memref<4x4x4xbf16, #tpu.memory_space<vmem>>, vector<1x4x4xbf16>
    %74 = vector.shape_cast %73 : vector<1x4x4xbf16> to vector<4x4xbf16>
    %cst_42 = arith.constant dense<0.000000e+00> : vector<4x256xf32>
    %75 = tpu.matmul %74, %72, %cst_42 {dimension_numbers = #tpu.dot_dimension_numbers<[1], [0], [0], [1], [0, 0, 1, 1], [], []>} : vector<4x4xbf16>, vector<4x256xbf16>, vector<4x256xf32> -> vector<4x256xf32>
    %c0_43 = arith.constant 0 : index
    %c0_44 = arith.constant 0 : index
    %76 = vector.load %arg5[%c0_43, %c0_44] : memref<4x1xf32, #tpu.memory_space<vmem>>, vector<4x1xf32>
    %77 = vector.broadcast %76 : vector<4x1xf32> to vector<4x256xf32>
    %78 = arith.addf %75, %77 : vector<4x256xf32>
    %cst_45 = arith.constant 0.000000e+00 : f32
    %79 = vector.broadcast %cst_45 : f32 to vector<4x256xf32>
    %80 = arith.maximumf %78, %79 : vector<4x256xf32>
    %81 = arith.truncf %80 : vector<4x256xf32> to vector<4x256xbf16>
    %c0_46 = arith.constant 0 : index
    %c0_47 = arith.constant 0 : index
    %82 = vector.load %arg11[%c0_46, %c0_47] : memref<4x1024xbf16, #tpu.memory_space<vmem>>, vector<4x256xbf16>
    tpu.vector_store %arg11[%c0_46, %c0_47], %81 {strides = array<i32>} : memref<4x1024xbf16, #tpu.memory_space<vmem>>, vector<4x256xbf16>,
    %c1 = arith.constant 1 : index
    %c0_48 = arith.constant 0 : index
    %c0_49 = arith.constant 0 : index
    %83 = vector.load %arg4[%c1, %c0_48, %c0_49] : memref<4x4x4xbf16, #tpu.memory_space<vmem>>, vector<1x4x4xbf16>
    %84 = vector.shape_cast %83 : vector<1x4x4xbf16> to vector<4x4xbf16>
    %cst_50 = arith.constant dense<0.000000e+00> : vector<4x256xf32>
    %85 = tpu.matmul %84, %72, %cst_50 {dimension_numbers = #tpu.dot_dimension_numbers<[1], [0], [0], [1], [0, 0, 1, 1], [], []>} : vector<4x4xbf16>, vector<4x256xbf16>, vector<4x256xf32> -> vector<4x256xf32>
    %c0_51 = arith.constant 0 : index
    %c0_52 = arith.constant 0 : index
    %86 = vector.load %arg5[%c0_51, %c0_52] : memref<4x1xf32, #tpu.memory_space<vmem>>, vector<4x1xf32>
    %87 = vector.broadcast %86 : vector<4x1xf32> to vector<4x256xf32>
    %88 = arith.addf %85, %87 : vector<4x256xf32>
    %cst_53 = arith.constant 0.000000e+00 : f32
    %89 = vector.broadcast %cst_53 : f32 to vector<4x256xf32>
    %90 = arith.maximumf %88, %89 : vector<4x256xf32>
    %91 = arith.truncf %90 : vector<4x256xf32> to vector<4x256xbf16>
    %c0_54 = arith.constant 0 : index
    %c256 = arith.constant 256 : index
    %92 = vector.load %arg11[%c0_54, %c256] : memref<4x1024xbf16, #tpu.memory_space<vmem>>, vector<4x256xbf16>
    tpu.vector_store %arg11[%c0_54, %c256], %91 {strides = array<i32>} : memref<4x1024xbf16, #tpu.memory_space<vmem>>, vector<4x256xbf16>,
    %c2 = arith.constant 2 : index
    %c0_55 = arith.constant 0 : index
    %c0_56 = arith.constant 0 : index
    %93 = vector.load %arg4[%c2, %c0_55, %c0_56] : memref<4x4x4xbf16, #tpu.memory_space<vmem>>, vector<1x4x4xbf16>
    %94 = vector.shape_cast %93 : vector<1x4x4xbf16> to vector<4x4xbf16>
    %cst_57 = arith.constant dense<0.000000e+00> : vector<4x256xf32>
    %95 = tpu.matmul %94, %72, %cst_57 {dimension_numbers = #tpu.dot_dimension_numbers<[1], [0], [0], [1], [0, 0, 1, 1], [], []>} : vector<4x4xbf16>, vector<4x256xbf16>, vector<4x256xf32> -> vector<4x256xf32>
    %c0_58 = arith.constant 0 : index
    %c0_59 = arith.constant 0 : index
    %96 = vector.load %arg5[%c0_58, %c0_59] : memref<4x1xf32, #tpu.memory_space<vmem>>, vector<4x1xf32>
    %97 = vector.broadcast %96 : vector<4x1xf32> to vector<4x256xf32>
    %98 = arith.addf %95, %97 : vector<4x256xf32>
    %cst_60 = arith.constant 0.000000e+00 : f32
    %99 = vector.broadcast %cst_60 : f32 to vector<4x256xf32>
    %100 = arith.maximumf %98, %99 : vector<4x256xf32>
    %101 = arith.truncf %100 : vector<4x256xf32> to vector<4x256xbf16>
    %c0_61 = arith.constant 0 : index
    %c512 = arith.constant 512 : index
    %102 = vector.load %arg11[%c0_61, %c512] : memref<4x1024xbf16, #tpu.memory_space<vmem>>, vector<4x256xbf16>
    tpu.vector_store %arg11[%c0_61, %c512], %101 {strides = array<i32>} : memref<4x1024xbf16, #tpu.memory_space<vmem>>, vector<4x256xbf16>,
    %c3 = arith.constant 3 : index
    %c0_62 = arith.constant 0 : index
    %c0_63 = arith.constant 0 : index
    %103 = vector.load %arg4[%c3, %c0_62, %c0_63] : memref<4x4x4xbf16, #tpu.memory_space<vmem>>, vector<1x4x4xbf16>
    %104 = vector.shape_cast %103 : vector<1x4x4xbf16> to vector<4x4xbf16>
    %cst_64 = arith.constant dense<0.000000e+00> : vector<4x256xf32>
    %105 = tpu.matmul %104, %72, %cst_64 {dimension_numbers = #tpu.dot_dimension_numbers<[1], [0], [0], [1], [0, 0, 1, 1], [], []>} : vector<4x4xbf16>, vector<4x256xbf16>, vector<4x256xf32> -> vector<4x256xf32>
    %c0_65 = arith.constant 0 : index
    %c0_66 = arith.constant 0 : index
    %106 = vector.load %arg5[%c0_65, %c0_66] : memref<4x1xf32, #tpu.memory_space<vmem>>, vector<4x1xf32>
    %107 = vector.broadcast %106 : vector<4x1xf32> to vector<4x256xf32>
    %108 = arith.addf %105, %107 : vector<4x256xf32>
    %cst_67 = arith.constant 0.000000e+00 : f32
    %109 = vector.broadcast %cst_67 : f32 to vector<4x256xf32>
    %110 = arith.maximumf %108, %109 : vector<4x256xf32>
    %111 = arith.truncf %110 : vector<4x256xf32> to vector<4x256xbf16>
    %c0_68 = arith.constant 0 : index
    %c768 = arith.constant 768 : index
    %112 = vector.load %arg11[%c0_68, %c768] : memref<4x1024xbf16, #tpu.memory_space<vmem>>, vector<4x256xbf16>
    tpu.vector_store %arg11[%c0_68, %c768], %111 {strides = array<i32>} : memref<4x1024xbf16, #tpu.memory_space<vmem>>, vector<4x256xbf16>,
    %c0_69 = arith.constant 0 : index
    %c0_70 = arith.constant 0 : index
    %113 = vector.load %arg6[%c0_69, %c0_70] : memref<32x4xbf16, #tpu.memory_space<vmem>>, vector<32x4xbf16>
    %c0_71 = arith.constant 0 : index
    %c0_72 = arith.constant 0 : index
    %114 = vector.load %arg11[%c0_71, %c0_72] : memref<4x1024xbf16, #tpu.memory_space<vmem>>, vector<4x1024xbf16>
    %cst_73 = arith.constant dense<0.000000e+00> : vector<32x1024xf32>
    %115 = tpu.matmul %113, %114, %cst_73 {dimension_numbers = #tpu.dot_dimension_numbers<[1], [0], [0], [1], [0, 0, 1, 1], [], []>} : vector<32x4xbf16>, vector<4x1024xbf16>, vector<32x1024xf32> -> vector<32x1024xf32>
    %c0_74 = arith.constant 0 : index
    %c0_75 = arith.constant 0 : index
    %116 = vector.load %arg7[%c0_74, %c0_75] : memref<32x1xf32, #tpu.memory_space<vmem>>, vector<32x1xf32>
    %117 = vector.broadcast %116 : vector<32x1xf32> to vector<32x1024xf32>
    %118 = arith.addf %115, %117 : vector<32x1024xf32>
    %119 = arith.truncf %118 : vector<32x1024xf32> to vector<32x1024xbf16>
    %c0_76 = arith.constant 0 : index
    %c0_77 = arith.constant 0 : index
    %c0_78 = arith.constant 0 : index
    %120 = vector.load %arg8[%c0_76, %c0_77, %c0_78] : memref<1x32x1024xbf16, #tpu.memory_space<vmem>>, vector<1x32x1024xbf16>
    %121 = vector.shape_cast %120 : vector<1x32x1024xbf16> to vector<32x1024xbf16>
    %122 = vector.shape_cast %119 : vector<32x1024xbf16> to vector<1x32x1024xbf16>
    tpu.vector_store %arg8[%c0_76, %c0_77, %c0_78], %122 {strides = array<i32>} : memref<1x32x1024xbf16, #tpu.memory_space<vmem>>, vector<1x32x1024xbf16>,
    return
  }
  func.func @transform_0(%arg0: i32) -> (i32, i32, i32) {
    %c0_i32 = arith.constant 0 : i32
    %c0_i32_0 = arith.constant 0 : i32
    %c0_i32_1 = arith.constant 0 : i32
    return %arg0, %c0_i32, %c0_i32_0 : i32, i32, i32
  }
  func.func @transform_1(%arg0: i32) -> (i32, i32) {
    %c0_i32 = arith.constant 0 : i32
    %c0_i32_0 = arith.constant 0 : i32
    %c0_i32_1 = arith.constant 0 : i32
    return %c0_i32, %c0_i32_0 : i32, i32
  }
  func.func @transform_2(%arg0: i32) -> (i32, i32) {
    %c0_i32 = arith.constant 0 : i32
    %c0_i32_0 = arith.constant 0 : i32
    %c0_i32_1 = arith.constant 0 : i32
    return %c0_i32, %c0_i32_0 : i32, i32
  }
  func.func @transform_3(%arg0: i32) -> (i32, i32, i32) {
    %c0_i32 = arith.constant 0 : i32
    %c0_i32_0 = arith.constant 0 : i32
    %c0_i32_1 = arith.constant 0 : i32
    %c0_i32_2 = arith.constant 0 : i32
    return %c0_i32, %c0_i32_0, %c0_i32_1 : i32, i32, i32
  }
  func.func @transform_4(%arg0: i32) -> (i32, i32) {
    %c0_i32 = arith.constant 0 : i32
    %c0_i32_0 = arith.constant 0 : i32
    %c0_i32_1 = arith.constant 0 : i32
    return %c0_i32, %c0_i32_0 : i32, i32
  }
  func.func @transform_5(%arg0: i32) -> (i32, i32) {
    %c0_i32 = arith.constant 0 : i32
    %c0_i32_0 = arith.constant 0 : i32
    %c0_i32_1 = arith.constant 0 : i32
    return %c0_i32, %c0_i32_0 : i32, i32
  }
  func.func @transform_6(%arg0: i32) -> (i32, i32) {
    %c0_i32 = arith.constant 0 : i32
    %c0_i32_0 = arith.constant 0 : i32
    %c0_i32_1 = arith.constant 0 : i32
    return %c0_i32, %c0_i32_0 : i32, i32
  }
  func.func @transform_7(%arg0: i32) -> (i32, i32, i32) {
    %c0_i32 = arith.constant 0 : i32
    %c0_i32_0 = arith.constant 0 : i32
    %c0_i32_1 = arith.constant 0 : i32
    return %arg0, %c0_i32, %c0_i32_0 : i32, i32, i32
  }
}

</mosaic_0001>

<bundles_post_ra>
// kernel: tile.8
= control target key start
LH: loop header
LB: loop body
LE: loop exit
PB: predicated region body
PF: predicated region fallthrough
CT: control target
= control target key end

     0   :  { %2 = vsyncpa [#allocation1], 0  ;;  %s48_s8 = smov [#allocation0]   ;;  %s65_s0 = inlined_call_operand.hbm [shape: f32[8], index: 0, kind: input, shape index: {}]   ;;  %s66_s1 = inlined_call_operand.vmem [shape: f32[4,8], index: 1, kind: output, shape index: {}]  }
   0x1   :  { %s8_s0 = sshll.u32 %s65_s0, 4  ;;  %s10_s9 = sshll.u32 %s48_s8, 4  ;;  %s9_s0 = int_to_ptr.hbm [resolvable:$true] %s8_s0  ;;  %s11_s9 = int_to_ptr.vmem [resolvable:$true] %s10_s9 }
   0x2   :  { %13 = dma.hbm_to_vmem [thread:$0]  %s9_s0, 16, %s11_s9, [#allocation1]  }
   0x3   :  { %46 = dma.done.wait [#allocation1], 16  }
   0x4   :  { %47 = vsyncadd [#allocation1], 4294967280  ;;  %v18_v0 = vld [vmem:[#allocation0] ss:$0 sm:$0xff] }
   0x5   :  { %19 = vst [vmem:[%s66_s1] sm:$0xf] %v18_v0 }
   0x6   :  { %20 = vsyncpa [#allocation1], 1 }

// kernel: tile.0
= control target key start
LH: loop header
LB: loop body
LE: loop exit
PB: predicated region body
PF: predicated region fallthrough
CT: control target
= control target key end

     0   :  { %s66_s8 = smov 125   ;;  %s67_s9 = smov 123   ;;  %vm7_vm0 = vcmask 7168   ;;  %s117_s0 = inlined_call_operand.vmem [shape: f32[4,8], index: 0, kind: input, shape index: {}]   ;;  %s118_s1 = inlined_call_operand.vmem [shape: f32[32,1], index: 1, kind: output, shape index: {}]  }
   0x1   :  { %v4_v0 = vld [vmem:[%s117_s0] sm:$0xf]  ;;  %s65_s0 = smov 127   ;;  %s68_s10 = smov 126  }
   0x2   :  { %5 = vst [vmem:[#allocation0] sm:$0xf] %v4_v0  ;;  %s69_s11 = smov 124   ;;  %s70_s12 = smov 122  }
   0x3   :  { %s71_s13 = smov 121  }
   0x9   :  { %v9_v1 = vld [vmem:[#allocation0] sm:$0xf]  }
   0xa   :  { %v21_v2 = vld [vmem:[#allocation0] sm:$0xf]   ;;  %10 = vrot.lane.b32.xlu0 %v9_v1, %s65_s0 }
   0xb   :  { %22 = vrot.lane.b32.xlu1 %v21_v2, %s66_s8  ;;  %v33_v3 = vld [vmem:[#allocation0] sm:$0xf]  }
   0xc   :  { %34 = vrot.lane.b32.xlu2 %v33_v3, %s67_s9  ;;  %v15_v4 = vld [vmem:[#allocation0] sm:$0xf]  }
   0xd   :  { %v27_v5 = vld [vmem:[#allocation0] sm:$0xf]  }
   0xe   :  { %v39_v6 = vld [vmem:[#allocation0] sm:$0xf]  }
   0xf   :  { %v45_v7 = vld [vmem:[#allocation0] sm:$0xf]  }
  0x10   :  { %v6_v8 = vld [vmem:[#allocation0] sm:$0xf]  }
  0x11   :  { %8 = vst.msk [vmem:[%s118_s1] ss:$8 sm:$0xf] %vm7_vm0, %v6_v8  }
  0x12   :  { %16 = vrot.lane.b32.xlu0 %v15_v4, %s68_s10 }
  0x13   :  { %28 = vrot.lane.b32.xlu1 %v27_v5, %s69_s11 }
  0x14   :  { %40 = vrot.lane.b32.xlu2 %v39_v6, %s70_s12 }
  0x1a   :  { %46 = vrot.lane.b32.xlu0 %v45_v7, %s71_s13 }
  0x66   :  { %v35_v9 = vpop.permute.xlu2 %34  }
  0x67   :  { %55 = vst.msk [vmem:[%s118_s1 + $0x5] ss:$8 sm:$0xf] %vm7_vm0, %v35_v9  }
  0x6e   :  { %v41_v10 = vpop.permute.xlu2 %40  }
  0x6f   :  { %56 = vst.msk [vmem:[%s118_s1 + $0x6] ss:$8 sm:$0xf] %vm7_vm0, %v41_v10  }
  0x7c   :  { %v11_v11 = vpop.permute.xlu0 %10  }
  0x7d   :  { %v23_v12 = vpop.permute.xlu1 %22   ;;  %51 = vst.msk [vmem:[%s118_s1 + $0x1] ss:$8 sm:$0xf] %vm7_vm0, %v11_v11  }
  0x7e   :  { %53 = vst.msk [vmem:[%s118_s1 + $0x3] ss:$8 sm:$0xf] %vm7_vm0, %v23_v12  }
  0x84   :  { %v17_v13 = vpop.permute.xlu0 %16  }
  0x85   :  { %v29_v14 = vpop.permute.xlu1 %28   ;;  %52 = vst.msk [vmem:[%s118_s1 + $0x2] ss:$8 sm:$0xf] %vm7_vm0, %v17_v13  }
  0x86   :  { %54 = vst.msk [vmem:[%s118_s1 + $0x4] ss:$8 sm:$0xf] %vm7_vm0, %v29_v14  }
  0x8c   :  { %v47_v15 = vpop.permute.xlu0 %46  }
  0x8d   :  { %57 = vst.msk [vmem:[%s118_s1 + $0x7] ss:$8 sm:$0xf] %vm7_vm0, %v47_v15  }

// kernel: keypoint_head_forward.1
= control target key start
LH: loop header
LB: loop body
LE: loop exit
PB: predicated region body
PF: predicated region fallthrough
CT: control target
= control target key end

     0   :  { %s1358_s24 = smov 0   ;;  %s1573_s0 = inlined_call_operand.vmem [shape: bf16[2,4,256], index: 0, kind: input, shape index: {}]   ;;  %s1574_s1 = inlined_call_operand.vmem [shape: bf16[4,36], index: 1, kind: input, shape index: {}]   ;;  %s1575_s2 = inlined_call_operand.vmem [shape: f32[4,1], index: 2, kind: input, shape index: {}]   ;;  %s1576_s3 = inlined_call_operand.vmem [shape: bf16[4,4,4], index: 3, kind: input, shape index: {}]   ;;  %s1577_s4 = inlined_call_operand.vmem [shape: f32[4,1], index: 4, kind: input, shape index: {}]   ;;  %s1578_s5 = inlined_call_operand.vmem [shape: bf16[32,4], index: 5, kind: input, shape index: {}]   ;;  %s1579_s6 = inlined_call_operand.vmem [shape: f32[32,1], index: 6, kind: input, shape index: {}]   ;;  %s1580_s7 = inlined_call_operand.vmem [shape: bf16[2,32,1024], index: 7, kind: output, shape index: {}]  }
   0x1 LB: > { %s1203_s25 = sadd.s32 4294967295, %s1306_s24   ;;  %p1207_p0 = scmp.ge.s32.totalorder %s1306_s24, 1  ;;  %s1306_s24 = sphi %s1358_s24, %s17_s24  }
   0x2   : > { %p237_p1 = scmp.lt.s32.totalorder %s1306_s24, 3 }
   0x4   : > { %p238_p2 = pnand %p1207_p0, %p237_p1 }
   0x5   : > { %s1309_s26 = smov (!%p238_p2), 111   ;;  %s1310_s27 = smov (!%p238_p2), 127  }
   0x6   : > { %241 = sbr.rel (%p238_p2) target bundleno = 875 (0x36b), region = 48  ;;  %s1311_s28 = smov (!%p238_p2), 15  }
   0x7   : > { %s1312_s29 = smov (!%p238_p2), 113   ;;  %s1313_s30 = smov (!%p238_p2), 1  }
   0x8   : > { %s1314_s8 = smov (!%p238_p2), 17   ;;  %p269_p3 = scmp.lt.s32.totalorder (!%p238_p2), %s1203_s25, 1 }
   0x9   : > { %s1316_s13 = smov (!%p238_p2), 16   ;;  %s1317_s14 = smov (!%p238_p2), 112  }
   0xb   : > { %v286_v0 = vlaneseq  ;;  %v1308_v5 = vmov 0.0   ;;  %vm335_vm3 = vcmask 1043456   ;;  %s1582_s25 = smov (!%p269_p3, %s1203_s25), 1  ;;  %vm280_vm5 = vcmask 1042296  }
   0xc   : > { %s1271_s9 = sshll.u32 %s1582_s25, 2  ;;  %v1315_v15 = vmov 0   ;;  %vm282_vm6 = vcmask 132096   ;;  %vm340_vm7 = vcmask 908288   ;;  %vm404_vm8 = vcmask 924672  }
   0xd   : > { %v287_v1 = vand.u32 127, %v286_v0  ;;  %s273_s12 = scalar_lea.vmem %s1573_s0, %s1271_s9  ;;  %281 = vst.msk [vmem:[#allocation2] sm:$0x3] %vm280_vm5, %v1315_v15  ;;  %1297 = vset.pattern.permute.xlu1 %v1315_v15  ;;  %1299 = vset.pattern.permute.xlu0 %v1315_v15  ;;  %vm442_vm9 = vcmask 1039360   ;;  %vm472_vm10 = vcmask 7168   ;;  %vm432_vm11 = vcmask 121856  }
   0xe   : > { %v284_v14 = vld [vmem:[%s273_s12] sm:$0xf]  ;;  %1298 = vset.pattern.permute.xlu2 %v1315_v15  ;;  %283 = vst.msk [vmem:[#allocation2 + $0x6] sm:$0x3] %vm282_vm6, %v1315_v15  ;;  %vm369_vm12 = vcmask 138240   ;;  %vm388_vm13 = vcmask 130048  }
   0xf   : > { %v288_v2 = vadd.s32 128, %v287_v1  ;;  %v293_v3 = vand.u32 15, %v287_v1  ;;  %285 = vst [vmem:[#allocation2 + $0x2] sm:$0xf] %v284_v14  ;;  %vm575_vm14 = vcmask 916480   ;;  %vm658_vm15 = vcmask 1041408  }
  0x11   : > { %v300_v4 = vand.u32 15, %v288_v2  ;;  %vm313_vm0 = vcmp.ne.s32.totalorder %v293_v3, 0  ;;  %vm320_vm4 = vcmp.ne.s32.totalorder %v293_v3, 15 }
  0x12   : > { %v1212_v6 = vsel %vm313_vm0, 1.0, %v1308_v5  ;;  %v1214_v12 = vsel %vm320_vm4, 1.0, %v1308_v5  ;;  %vm654_vm0 = vcmask 293888  }
  0x13   : > { %vm314_vm1 = vcmp.ne.s32.totalorder %v300_v4, 0  ;;  %vm321_vm2 = vcmp.ne.s32.totalorder %v300_v4, 15 }
  0x14   : > { %v1213_v7 = vsel %vm314_vm1, 1.0, %v1308_v5  ;;  %v1215_v9 = vsel %vm321_vm2, 1.0, %v1308_v5  ;;  %vm702_vm1 = vcmask 31744  }
  0x15   : > { %v334_v8 = vrot.slane %v1213_v7, 4  ;;  %v399_v11 = vrot.slane %v1215_v9, 4 }
  0x16   : > { %v327_v16 = vld [vmem:[#allocation2] sm:$0x3f] }
  0x17   : > { %v336_v10 = vsel %vm335_vm3, %v1212_v6, %v334_v8  ;;  %v400_v13 = vsel %vm335_vm3, %v1214_v12, %v399_v11  ;;  %v329_v17 = vunpack.c.h.bf16 %v327_v16  ;;  %v328_v19 = vunpack.c.l.bf16 %v327_v16  ;;  %v392_v24 = vld [vmem:[#allocation2] sm:$0x3f] }
  0x18   : > { %337 = vrot.lane.b32.xlu0 %v336_v10, %s1309_s26  ;;  %439 = vrot.lane.b32.xlu1 %v336_v10, %s1310_s27  ;;  %v394_v25 = vunpack.c.h.bf16 %v392_v24  ;;  %v436_v29 = vld [vmem:[#allocation2] sm:$0x3f]  ;;  %v393_v39 = vunpack.c.l.bf16 %v392_v24 }
  0x19   : > { %525 = vrot.lane.b32.xlu2 %v336_v10, %s1311_s28  ;;  %v373_v32 = vld [vmem:[#allocation2] sm:$0x3f]  ;;  %v438_v34 = vunpack.c.h.bf16 %v436_v29  ;;  %v437_v51 = vunpack.c.l.bf16 %v436_v29 }
  0x1a   : > { %v482_v43 = vld [vmem:[#allocation2 + $0x2] sm:$0x3f] }
  0x1b   : > { %v484_v46 = vunpack.c.h.bf16 %v482_v43  ;;  %v522_v54 = vld [vmem:[#allocation2 + $0x2] sm:$0x3f]  ;;  %v483_v8 = vunpack.c.l.bf16 %v482_v43 }
  0x1c   : > { %v524_v57 = vunpack.c.h.bf16 %v522_v54  ;;  %v579_v63 = vld [vmem:[#allocation2 + $0x2] sm:$0x3f]  ;;  %v523_v15 = vunpack.c.l.bf16 %v522_v54 }
  0x1d   : > { %v476_v0 = vld [vmem:[#allocation2 + $0x2] sm:$0xf]  ;;  %v581_v2 = vunpack.c.h.bf16 %v579_v63  ;;  %v580_v29 = vunpack.c.l.bf16 %v579_v63 }
  0x1e   : > { %v560_v24 = vld [vmem:[#allocation2 + $0x2] sm:$0x3f] }
  0x20   : > { %401 = vrot.lane.b32.xlu0 %v400_v13, %s1312_s29  ;;  %485 = vrot.lane.b32.xlu1 %v400_v13, %s1313_s30 }
  0x21   : > { %582 = vrot.lane.b32.xlu2 %v400_v13, %s1314_s8 }
  0x73   : > { %v526_v50 = vpop.permute.xlu2 %525 }
  0x74   : > { %v527_v58 = vrot.slane %v526_v50, 4 }
  0x76   : > { %v533_v61 = vmul.f32 %v527_v58, %v524_v57  ;;  %v529_v16 = vsel %vm432_vm11, %v527_v58, %v526_v50 }
  0x7b   : > { %v583_v62 = vpop.permute.xlu2 %582 }
  0x7c   : > { %v584_v3 = vrot.slane %v583_v62, 4 }
  0x7e   : > { %v590_v9 = vmul.f32 %v584_v3, %v581_v2 }
  0x8a   : > { %v338_v18 = vpop.permute.xlu0 %337  ;;  %v440_v27 = vpop.permute.xlu1 %439 }
  0x8b   : > { %v339_v20 = vrot.slane %v338_v18, 4  ;;  %v441_v35 = vrot.slane %v440_v27, 4 }
  0x8d   : > { %v341_v21 = vsel %vm340_vm7, %v339_v20, %v338_v18  ;;  %v345_v22 = vmul.f32 %v339_v20, %v329_v17  ;;  %v447_v40 = vmul.f32 %v441_v35, %v438_v34  ;;  %v443_v53 = vsel %vm442_vm9, %v441_v35, %v440_v27 }
  0x8e   : > { %v344_v23 = vmul.f32 %v341_v21, %v328_v19  ;;  %v446_v56 = vmul.f32 %v443_v53, %v437_v51  ;;  %v532_v18 = vmul.f32 %v529_v16, %v523_v15 }
  0x8f   : > { %350 = vst [vmem:[#allocation1 + $0x10] ss:$2 sm:$0xff] %v345_v22 }
  0x90   : > { %348 = vst [vmem:[#allocation1] ss:$2 sm:$0xff] %v344_v23 }
  0x92   : > { %v402_v26 = vpop.permute.xlu0 %401  ;;  %v486_v42 = vpop.permute.xlu1 %485 }
  0x93   : > { %v403_v28 = vrot.slane %v402_v26, 4  ;;  %v487_v47 = vrot.slane %v486_v42, 4 }
  0x95   : > { %v409_v30 = vmul.f32 %v403_v28, %v394_v25  ;;  %v405_v41 = vsel %vm404_vm8, %v403_v28, %v402_v26  ;;  %v493_v52 = vmul.f32 %v487_v47, %v484_v46  ;;  %v489_v10 = vsel %vm472_vm10, %v487_v47, %v486_v42 }
  0x96   : > { %v353_v31 = vld.sshfl [vmem:[#allocation1 + $0x10] sm:$0xff pattern:$0x75316420]  ;;  %v408_v45 = vmul.f32 %v405_v41, %v393_v39  ;;  %v492_v12 = vmul.f32 %v489_v10, %v483_v8  ;;  %v797_v8 = vld [vmem:[%s1577_s4] sm:$0xf] }
  0x97   : > { %414 = vst [vmem:[#allocation1 + $0x10] ss:$2 sm:$0xff] %v409_v30  ;;  %v358_v33 = vpack.c.bf16 %v353_v31, %v353_v31  ;;  %v351_v36 = vld.sshfl [vmem:[#allocation1] sm:$0xff pattern:$0x75316420]  ;;  %v586_v31 = vsel %vm369_vm12, %v584_v3, %v583_v62 }
  0x98   : > { %v352_v37 = vld.sshfl [vmem:[#allocation1 + $0x8] sm:$0xff pattern:$0x75316420]  ;;  %v623_v3 = vld [vmem:[%s1575_s2] sm:$0xf] }
  0x99   : > { %363 = vrot.lane.b32.xlu0 %v358_v33, %s1314_s8  ;;  %v357_v38 = vpack.c.bf16 %v352_v37, %v351_v36  ;;  %376 = vst [vmem:[#allocation1 + $0x1] ss:$2 sm:$0xff] %v373_v32  ;;  %v589_v32 = vmul.f32 %v586_v31, %v580_v29 }
  0x9b   : > { %361 = vrot.lane.b32.xlu2 %v357_v38, %s1314_s8 }
  0x9e   : > { %v1388_v44 = vld.sshfl [vmem:[#allocation1 + $0x10] sm:$0xff pattern:$0x75316420] }
  0x9f   : > { %452 = vst [vmem:[#allocation1 + $0x10] ss:$2 sm:$0xff] %v447_v40  ;;  %v422_v38 = vpack.c.bf16 %v1388_v44, %v1388_v44 }
  0xa0   : > { %v377_v48 = vld.sshfl [vmem:[#allocation1] sm:$0xff pattern:$0x75643120]  ;;  %v379_v49 = vld.sshfl [vmem:[#allocation1 + $0x8] sm:$0xff pattern:$0x75643120] }
  0xa1   : > { %381 = vrot.lane.b32.xlu1 %v377_v48, %s1316_s13  ;;  %412 = vst [vmem:[#allocation1] ss:$2 sm:$0xff] %v408_v45 }
  0xa3   : > { %383 = vrot.lane.b32.xlu2 %v379_v49, %s1316_s13 }
  0xa6   : > { %v1391_v55 = vld.sshfl [vmem:[#allocation1 + $0x10] sm:$0xff pattern:$0x75316420] }
  0xa7   : > { %498 = vst [vmem:[#allocation1 + $0x10] ss:$2 sm:$0xff] %v493_v52  ;;  %v460_v40 = vpack.c.bf16 %v1391_v55, %v1391_v55 }
  0xa8   : > { %v1393_v59 = vld.sshfl [vmem:[#allocation1] sm:$0xff pattern:$0x75316420]  ;;  %v1395_v60 = vld.sshfl [vmem:[#allocation1 + $0x8] sm:$0xff pattern:$0x75316420] }
  0xa9   : > { %450 = vst [vmem:[#allocation1] ss:$2 sm:$0xff] %v446_v56  ;;  %v421_v39 = vpack.c.bf16 %v1395_v60, %v1393_v59  ;;  %v464_v41 = vrot.slane %v460_v40, 6 }
  0xae   : > { %v501_v1 = vld.sshfl [vmem:[#allocation1 + $0x10] sm:$0xff pattern:$0x75316420] }
  0xaf   : > { %v506_v4 = vpack.c.bf16 %v501_v1, %v501_v1  ;;  %538 = vst [vmem:[#allocation1 + $0x10] ss:$2 sm:$0xff] %v533_v61 }
  0xb0   : > { %v453_v5 = vld.sshfl [vmem:[#allocation1] sm:$0xff pattern:$0x75316420]  ;;  %v454_v6 = vld.sshfl [vmem:[#allocation1 + $0x8] sm:$0xff pattern:$0x75316420] }
  0xb1   : > { %478 = vst [vmem:[#allocation1] ss:$2 sm:$0xff] %v476_v0  ;;  %v510_v7 = vrot.slane %v506_v4, 6  ;;  %v459_v25 = vpack.c.bf16 %v454_v6, %v453_v5 }
  0xb3   : > { %513 = vrot.lane.b32.xlu0 %v510_v7, %s1310_s27  ;;  %v463_v30 = vrot.slane %v459_v25, 6 }
  0xb6   : > { %v541_v11 = vld.sshfl [vmem:[#allocation1 + $0x10] sm:$0xff pattern:$0x75316420] }
  0xb7   : > { %v546_v13 = vpack.c.bf16 %v541_v11, %v541_v11  ;;  %595 = vst [vmem:[#allocation1 + $0x10] ss:$2 sm:$0xff] %v590_v9 }
  0xb8   : > { %v479_v14 = vld.sshfl [vmem:[#allocation1] sm:$0xff pattern:$0x75643120] }
  0xb9   : > { %551 = vrot.lane.b32.xlu2 %v546_v13, %s1312_s29  ;;  %496 = vst [vmem:[#allocation1] ss:$2 sm:$0xff] %v492_v12 }
  0xba   : > { %481 = vst [vmem:[#allocation3 + $0x10] sm:$0x33] %v479_v14  ;;  %v895_v14 = vld [vmem:[%s1579_s6] sm:$0xff] }
  0xbe   : > { %v598_v17 = vld.sshfl [vmem:[#allocation1 + $0x10] sm:$0xff pattern:$0x75316420] }
  0xbf   : > { %v603_v19 = vpack.c.bf16 %v598_v17, %v598_v17 }
  0xc0   : > { %v499_v20 = vld.sshfl [vmem:[#allocation1] sm:$0xff pattern:$0x75316420]  ;;  %v500_v21 = vld.sshfl [vmem:[#allocation1 + $0x8] sm:$0xff pattern:$0x75316420] }
  0xc1   : > { %608 = vrot.lane.b32.xlu1 %v603_v19, %s1309_s26  ;;  %v505_v22 = vpack.c.bf16 %v500_v21, %v499_v20  ;;  %536 = vst [vmem:[#allocation1] ss:$2 sm:$0xff] %v532_v18  ;;  %v898_v21 = vld [vmem:[%s1579_s6 + $0x18] sm:$0xff] }
  0xc3   : > { %v509_v23 = vrot.slane %v505_v22, 6 }
  0xc5   : > { %511 = vrot.lane.b32.xlu2 %v509_v23, %s1310_s27 }
  0xc8   : > { %v539_v26 = vld.sshfl [vmem:[#allocation1] sm:$0xff pattern:$0x75316420]  ;;  %v540_v27 = vld.sshfl [vmem:[#allocation1 + $0x8] sm:$0xff pattern:$0x75316420] }
  0xc9   : > { %v545_v28 = vpack.c.bf16 %v540_v27, %v539_v26  ;;  %563 = vst [vmem:[#allocation1 + $0x1] ss:$2 sm:$0xff] %v560_v24 }
  0xcb   : > { %549 = vrot.lane.b32.xlu1 %v545_v28, %s1312_s29 }
  0xcd   : > { %465 = vrot.lane.b32.xlu2 %v463_v30, %s1313_s30 }
  0xd0   : > { %v564_v33 = vld.sshfl [vmem:[#allocation1] sm:$0xff pattern:$0x75643120]  ;;  %v566_v34 = vld.sshfl [vmem:[#allocation1 + $0x8] sm:$0xff pattern:$0x75643120] }
  0xd1   : > { %568 = vrot.lane.b32.xlu0 %v564_v33, %s1317_s14  ;;  %593 = vst [vmem:[#allocation1] ss:$2 sm:$0xff] %v589_v32 }
  0xd3   : > { %570 = vrot.lane.b32.xlu1 %v566_v34, %s1317_s14 }
  0xd8   : > { %v596_v35 = vld.sshfl [vmem:[#allocation1] sm:$0xff pattern:$0x75316420]  ;;  %v597_v36 = vld.sshfl [vmem:[#allocation1 + $0x8] sm:$0xff pattern:$0x75316420] }
  0xd9   : > { %v602_v37 = vpack.c.bf16 %v597_v36, %v596_v35 }
  0xdb   : > { %606 = vrot.lane.b32.xlu0 %v602_v37, %s1309_s26  ;;  %427 = vrot.lane.b32.xlu1 %v422_v38, %s1311_s28 }
  0xe3   : > { %425 = vrot.lane.b32.xlu0 %v421_v39, %s1311_s28  ;;  %626 = vperm.xlu1 %1297, %v623_v3   ;;  %v696_v3 = vld [vmem:[%s1577_s4] sm:$0xf]  ;;  %s1272_s28 = sshll.u32 %s1582_s25, 7 }
  0xe4   : > { %699 = vperm.xlu2 %1298, %v696_v3   ;;  %s1522_s8 = scalar_lea.vmem %s1580_s7, %s1272_s28 }
  0xeb   : > { %467 = vrot.lane.b32.xlu0 %v464_v41, %s1313_s30  ;;  %800 = vperm.xlu1 %1297, %v797_v8  }
  0xf3   : > { %901 = vperm.xlu1 %1297, %v895_v14  }
  0xf5   : > { %v362_v42 = vpop.permute.xlu2 %361 }
  0xf6   : > { %v365_v45 = vrot.slane %v362_v42, 4 }
  0xfb   : > { %916 = vperm.xlu1 %1297, %v898_v21  }
  0xfd   : > { %v384_v48 = vpop.permute.xlu2 %383 }
  0xfe   : > { %v386_v50 = vrot.slane %v384_v48, 4 }
 0x10b   : > { %v364_v43 = vpop.permute.xlu0 %363 }
 0x10c   : > { %v366_v46 = vrot.slane %v364_v43, 4 }
 0x10e   : > { %v368_v44 = vsel %vm335_vm3, %v365_v45, %v366_v46 }
 0x10f   : > { %v370_v47 = vsel %vm369_vm12, %v362_v42, %v368_v44 }
 0x110   : > { %372 = vst [vmem:[#allocation3] sm:$0x33] %v370_v47 }
 0x113   : > { %v382_v49 = vpop.permute.xlu1 %381  ;;  %v552_v54 = vpop.permute.xlu2 %551 }
 0x114   : > { %v385_v51 = vrot.slane %v382_v49, 4  ;;  %v554_v63 = vrot.slane %v552_v54, 4 }
 0x116   : > { %v387_v52 = vsel %vm335_vm3, %v385_v51, %v386_v50  ;;  %v750_v50 = vld [vmem:[%s1577_s4] sm:$0xf] }
 0x117   : > { %v389_v53 = vsel %vm388_vm13, %v382_v49, %v387_v52  ;;  %v617_v49 = vld [vmem:[%s1574_s1] sm:$0x3]  ;;  %753 = vperm.xlu0 %1299, %v750_v50  }
 0x118   : > { %391 = vst [vmem:[#allocation3] sm:$0xcc] %v389_v53 }
 0x11f   : > { %v512_v55 = vpop.permute.xlu2 %511  ;;  %v1218_v43 = vld [vmem:[#allocation3] sm:$0xf]  ;;  %v1273_v46 = vld [vmem:[#allocation3 + $0x4] sm:$0xf] }
 0x120   : > { %v515_v57 = vrot.slane %v512_v55, 4 }
 0x125   : > { %v514_v56 = vpop.permute.xlu0 %513 }
 0x126   : > { %v516_v58 = vrot.slane %v514_v56, 4 }
 0x127   : > { %v466_v27 = vpop.permute.xlu2 %465 }
 0x128   : > { %v517_v59 = vsel %vm335_vm3, %v515_v57, %v516_v58  ;;  %v469_v32 = vrot.slane %v466_v27, 4 }
 0x129   : > { %v519_v60 = vsel %vm442_vm9, %v512_v55, %v517_v59 }
 0x12a   : > { %521 = vst [vmem:[#allocation3 + $0x10] sm:$0xcc] %v519_v60 }
 0x131   : > { %v1226_v38 = vld [vmem:[#allocation3 + $0x10] sm:$0xf]  ;;  %v1275_v39 = vld [vmem:[#allocation3 + $0x14] sm:$0xf] }
 0x133   : > { %v609_v61 = vpop.permute.xlu1 %608 }
 0x134   : > { %v611_v12 = vrot.slane %v609_v61, 4 }
 0x13d   : > { %v550_v62 = vpop.permute.xlu1 %549 }
 0x13e   : > { %v553_v0 = vrot.slane %v550_v62, 4 }
 0x140   : > { %v555_v1 = vsel %vm335_vm3, %v553_v0, %v554_v63  ;;  %v695_v0 = vld [vmem:[%s1576_s3] sm:$0x3] }
 0x141   : > { %v557_v2 = vsel %vm404_vm8, %v550_v62, %v555_v1  ;;  %v1239_v1 = vld [vmem:[%s1576_s3 + $0x4] sm:$0x3] }
 0x142   : > { %559 = vst [vmem:[#allocation3 + $0x18] sm:$0x33] %v557_v2  ;;  %v897_v2 = vld [vmem:[%s1579_s6 + $0x10] sm:$0xff] }
 0x143   : > { %v569_v4 = vpop.permute.xlu0 %568  ;;  %911 = vperm.xlu0 %1299, %v897_v2  }
 0x144   : > { %v572_v6 = vrot.slane %v569_v4, 4 }
 0x145   : > { %v571_v5 = vpop.permute.xlu1 %570 }
 0x146   : > { %v573_v7 = vrot.slane %v571_v5, 4  ;;  %v1236_v5 = vld [vmem:[%s1576_s3 + $0x2] sm:$0x3] }
 0x148   : > { %v574_v9 = vsel %vm335_vm3, %v572_v6, %v573_v7  ;;  %v896_v6 = vld [vmem:[%s1579_s6 + $0x8] sm:$0xff]  ;;  %v1242_v7 = vld [vmem:[%s1576_s3 + $0x6] sm:$0x3] }
 0x149   : > { %v576_v10 = vsel %vm575_vm14, %v569_v4, %v574_v9  ;;  %v844_v4 = vld [vmem:[%s1577_s4] sm:$0xf] }
 0x14a   : > { %578 = vst [vmem:[#allocation3 + $0x18] sm:$0xcc] %v576_v10  ;;  %847 = vperm.xlu2 %1298, %v844_v4  }
 0x14d   : > { %v607_v11 = vpop.permute.xlu0 %606  ;;  %v428_v17 = vpop.permute.xlu1 %427 }
 0x14e   : > { %v610_v13 = vrot.slane %v607_v11, 4  ;;  %v430_v19 = vrot.slane %v428_v17, 4 }
 0x150   : > { %v612_v15 = vsel %vm335_vm3, %v610_v13, %v611_v12 }
 0x151   : > { %v614_v16 = vsel %vm340_vm7, %v607_v11, %v612_v15  ;;  %v1276_v31 = vld [vmem:[#allocation3 + $0x14] sm:$0xf0]  ;;  %v1228_v36 = vld [vmem:[#allocation3 + $0x18] sm:$0xf0]  ;;  %v700_v15 = vpop.permute.xlu2 %699 }
 0x152   : > { %616 = vst [vmem:[#allocation3 + $0x20] sm:$0x33] %v614_v16  ;;  %v1227_v41 = vor.u32 %v1276_v31, %v1226_v38  ;;  %v1231_v42 = vor.u32 %v1275_v39, %v1228_v36  ;;  %906 = vperm.xlu2 %1298, %v896_v6  }
 0x155   : > { %v426_v18 = vpop.permute.xlu0 %425  ;;  %v627_v51 = vpop.permute.xlu1 %626 }
 0x156   : > { %v429_v20 = vrot.slane %v426_v18, 4 }
 0x158   : > { %v431_v22 = vsel %vm335_vm3, %v429_v20, %v430_v19 }
 0x159   : > { %v433_v23 = vsel %vm432_vm11, %v426_v18, %v431_v22  ;;  %v622_v24 = vld [vmem:[#allocation3 + $0x20] sm:$0x33] }
 0x15a   : > { %435 = vst [vmem:[#allocation3 + $0x8] sm:$0x33] %v433_v23  ;;  %v642_v25 = vunpack.c.l.b16 %v622_v24  ;;  %v643_v26 = vunpack.c.h.b16 %v622_v24 }
 0x15c   : > { %v648_v28 = vpack.c.b16 %v642_v25, %v642_v25  ;;  %v649_v29 = vpack.c.b16 %v643_v26, %v643_v26 }
 0x15d   : > { %v468_v30 = vpop.permute.xlu0 %467  ;;  %v801_v8 = vpop.permute.xlu1 %800 }
 0x15e   : > { %v470_v33 = vrot.slane %v468_v30, 4  ;;  %v660_v34 = vsel %vm658_vm15, %v648_v28, 0  ;;  %v663_v35 = vsel %vm658_vm15, %v649_v29, 0 }
 0x15f   : > { %670 = vmatpush.bf16.msra.mxu0 %v660_v34  ;;  %683 = vmatpush.bf16.msra.mxu1 %v663_v35 }
 0x160   : > { %v471_v37 = vsel %vm335_vm3, %v469_v32, %v470_v33 }
 0x161   : > { %v473_v40 = vsel %vm472_vm10, %v466_v27, %v471_v37 }
 0x162   : > { %475 = vst [vmem:[#allocation3 + $0x8] sm:$0xcc] %v473_v40 }
 0x163   : > { %671 = vmatpush.bf16.msra.mxu0 %v1227_v41  ;;  %684 = vmatpush.bf16.msra.mxu1 %v1231_v42 }
 0x169   : > { %v1274_v45 = vld [vmem:[#allocation3 + $0x4] sm:$0xf0]  ;;  %v1220_v44 = vld [vmem:[#allocation3 + $0x8] sm:$0xf0] }
 0x16a   : > { %v1219_v47 = vor.u32 %v1274_v45, %v1218_v43  ;;  %v1223_v48 = vor.u32 %v1273_v46, %v1220_v44 }
 0x16c   : > { %672 = vmatpush.bf16.msra.mxu0 %v1219_v47  ;;  %685 = vmatpush.bf16.msra.mxu1 %v1223_v48 }
 0x16f   : > { %1232 = vmatmul.msk.bf16.vlgmr.msra.gmra.mxu0 %vm654_vm0, %v617_v49  ;;  %1233 = vmatmul.msk.bf16.vlgmr.msra.gmra.mxu1 %vm654_vm0, %v617_v49 }
 0x189   : > { %v754_v32 = vpop.permute.xlu0 %753 }
 0x1a4   : > { %v848_v45 = vpop.permute.xlu2 %847 }
 0x1ec   : > { %v674_v52 = vpop.f32.mrf.mxu0  ;;  %v687_v53 = vpop.f32.mrf.mxu1 }
 0x1ed   : > { %v675_v54 = vadd.f32 %v674_v52, %v627_v51  ;;  %v688_v55 = vadd.f32 %v687_v53, %v627_v51 }
 0x1ef   : > { %v691_v56 = vmax.f32 %v675_v54, 0.0  ;;  %v692_v57 = vmax.f32 %v688_v55, 0.0 }
 0x1f1   : > { %v693_v58 = vpack.c.bf16 %v691_v56, %v691_v56  ;;  %v694_v59 = vpack.c.bf16 %v692_v57, %v692_v57 }
 0x1f3   : > { %v707_v60 = vsel %vm658_vm15, %v693_v58, 0  ;;  %v710_v61 = vsel %vm658_vm15, %v694_v59, 0 }
 0x1f4   : > { %v676_v62 = vpop.f32.mrf.mxu0  ;;  %v689_v63 = vpop.f32.mrf.mxu1  ;;  %719 = vmatpush.bf16.msra.mxu2 %v707_v60  ;;  %732 = vmatpush.bf16.msra.mxu3 %v710_v61 }
 0x1f5   : > { %813 = vmatpush.bf16.msrb.mxu0 %v707_v60  ;;  %826 = vmatpush.bf16.msrb.mxu1 %v710_v61 }
 0x1f7   : > { %1234 = vmatmul.msk.bf16.vlgmr.msra.gmra.mxu2 %vm702_vm1, %v695_v0  ;;  %1235 = vmatmul.msk.bf16.vlgmr.msra.gmra.mxu3 %vm702_vm1, %v695_v0 }
 0x1f8   : > { %766 = vmatpush.bf16.msrb.mxu2 %v707_v60  ;;  %779 = vmatpush.bf16.msrb.mxu3 %v710_v61 }
 0x1f9   : > { %1240 = vmatmul.msk.bf16.vlgmr.msrb.gmra.mxu0 %vm702_vm1, %v1239_v1  ;;  %1241 = vmatmul.msk.bf16.vlgmr.msrb.gmra.mxu1 %vm702_vm1, %v1239_v1 }
 0x1fc   : > { %860 = vmatpush.bf16.msra.mxu2 %v707_v60  ;;  %873 = vmatpush.bf16.msra.mxu3 %v710_v61  ;;  %v1277_v61 = vld [vmem:[%s1578_s5] sm:$0xff] }
 0x207   : > { %1237 = vmatmul.msk.bf16.vlgmr.msrb.gmra.mxu2 %vm702_vm1, %v1236_v5  ;;  %1238 = vmatmul.msk.bf16.vlgmr.msrb.gmra.mxu3 %vm702_vm1, %v1236_v5 }
 0x217   : > { %1243 = vmatmul.msk.bf16.vlgmr.msra.gmra.mxu2 %vm702_vm1, %v1242_v7  ;;  %1244 = vmatmul.msk.bf16.vlgmr.msra.gmra.mxu3 %vm702_vm1, %v1242_v7 }
 0x276   : > { %v815_v9 = vpop.f32.mrf.mxu0  ;;  %v828_v10 = vpop.f32.mrf.mxu1 }
 0x277   : > { %v816_v11 = vadd.f32 %v815_v9, %v801_v8  ;;  %v829_v12 = vadd.f32 %v828_v10, %v801_v8  ;;  %v1278_v8 = vld [vmem:[%s1578_s5 + $0x8] sm:$0xff] }
 0x279   : > { %v832_v13 = vmax.f32 %v816_v11, 0.0  ;;  %v833_v14 = vmax.f32 %v829_v12, 0.0  ;;  %v902_v12 = vpop.permute.xlu1 %901 }
 0x27a   : > { %v721_v17 = vpop.f32.mrf.mxu2  ;;  %v734_v18 = vpop.f32.mrf.mxu3 }
 0x27b   : > { %v834_v16 = vpack.c.bf16 %v833_v14, %v832_v13  ;;  %v722_v19 = vadd.f32 %v721_v17, %v700_v15  ;;  %v735_v20 = vadd.f32 %v734_v18, %v700_v15  ;;  %v1525_v18 = vpop.permute.xlu2 %906 }
 0x27d   : > { %v836_v21 = vrot.slane %v834_v16, 2  ;;  %v738_v22 = vmax.f32 %v722_v19, 0.0  ;;  %v739_v23 = vmax.f32 %v735_v20, 0.0 }
 0x27e   : > { %v817_v24 = vpop.f32.mrf.mxu0  ;;  %v830_v25 = vpop.f32.mrf.mxu1 }
 0x27f   : > { %v839_v26 = vsel %vm658_vm15, %v834_v16, %v836_v21  ;;  %v740_v27 = vpack.c.bf16 %v739_v23, %v738_v22 }
 0x280   : > { %841 = vst [vmem:[#allocation4 + $0x8] sm:$0xf] %v839_v26 }
 0x281   : > { %v742_v28 = vrot.slane %v740_v27, 2 }
 0x282   : > { %v723_v29 = vpop.f32.mrf.mxu2  ;;  %v736_v30 = vpop.f32.mrf.mxu3 }
 0x283   : > { %v745_v31 = vsel %vm658_vm15, %v740_v27, %v742_v28  ;;  %v1531_v29 = vpop.permute.xlu0 %911 }
 0x284   : > { %747 = vst [vmem:[#allocation4] sm:$0xf] %v745_v31 }
 0x28a   : > { %v768_v33 = vpop.f32.mrf.mxu2  ;;  %v781_v34 = vpop.f32.mrf.mxu3 }
 0x28b   : > { %v769_v35 = vadd.f32 %v768_v33, %v754_v32  ;;  %v782_v36 = vadd.f32 %v781_v34, %v754_v32 }
 0x28d   : > { %v785_v37 = vmax.f32 %v769_v35, 0.0  ;;  %v786_v38 = vmax.f32 %v782_v36, 0.0 }
 0x28f   : > { %v787_v39 = vpack.c.bf16 %v786_v38, %v785_v37 }
 0x291   : > { %v789_v40 = vrot.slane %v787_v39, 2 }
 0x292   : > { %v770_v41 = vpop.f32.mrf.mxu2  ;;  %v783_v42 = vpop.f32.mrf.mxu3 }
 0x293   : > { %v792_v43 = vsel %vm658_vm15, %v787_v39, %v789_v40  ;;  %v1539_v40 = vpop.permute.xlu1 %916 }
 0x294   : > { %794 = vst [vmem:[#allocation4 + $0x4] sm:$0xf] %v792_v43 }
 0x29a   : > { %v862_v46 = vpop.f32.mrf.mxu2  ;;  %v875_v44 = vpop.f32.mrf.mxu3 }
 0x29b   : > { %v893_v47 = vld [vmem:[#allocation4] sm:$0xff]  ;;  %v863_v48 = vadd.f32 %v862_v46, %v848_v45  ;;  %v876_v49 = vadd.f32 %v875_v44, %v848_v45 }
 0x29c   : > { %930 = vst [vmem:[#allocation1] ss:$4 sm:$0xff] %v893_v47 }
 0x29d   : > { %v879_v50 = vmax.f32 %v863_v48, 0.0  ;;  %v880_v51 = vmax.f32 %v876_v49, 0.0 }
 0x29f   : > { %v881_v52 = vpack.c.bf16 %v880_v51, %v879_v50 }
 0x2a1   : > { %v883_v53 = vrot.slane %v881_v52, 2 }
 0x2a2   : > { %v864_v54 = vpop.f32.mrf.mxu2  ;;  %v877_v55 = vpop.f32.mrf.mxu3 }
 0x2a3   : > { %v886_v56 = vsel %vm658_vm15, %v881_v52, %v883_v53  ;;  %v934_v57 = vld.sshfl [vmem:[#allocation1] sm:$0xff pattern:$0x73625140]  ;;  %v935_v58 = vld.sshfl [vmem:[#allocation1 + $0x8] sm:$0xff pattern:$0x73625140] }
 0x2a4   : > { %888 = vst [vmem:[#allocation4 + $0xc] sm:$0xf] %v886_v56  ;;  %v948_v59 = vsel %vm658_vm15, %v934_v57, 0  ;;  %v950_v60 = vsel %vm658_vm15, %v935_v58, 0 }
 0x2a5   : > { %971 = vmatpush.bf16.msra.mxu0 %v948_v59  ;;  %990 = vmatpush.bf16.msra.mxu1 %v950_v60  ;;  %v936_v62 = vld.sshfl [vmem:[#allocation1 + $0x10] sm:$0xff pattern:$0x73625140]  ;;  %v937_v63 = vld.sshfl [vmem:[#allocation1 + $0x18] sm:$0xff pattern:$0x73625140] }
 0x2a6   : > { %v952_v0 = vsel %vm658_vm15, %v936_v62, 0  ;;  %v954_v1 = vsel %vm658_vm15, %v937_v63, 0 }
 0x2a7   : > { %1009 = vmatpush.bf16.msrb.mxu2 %v952_v0  ;;  %1028 = vmatpush.bf16.msrb.mxu3 %v954_v1 }
 0x2a8   : > { %1253 = vmatmul.msk.bf16.vlgmr.msra.gmra.mxu0 %vm702_vm1, %v1277_v61  ;;  %1255 = vmatmul.msk.bf16.vlgmr.msra.gmra.mxu1 %vm702_vm1, %v1277_v61 }
 0x2aa   : > { %1257 = vmatmul.msk.bf16.vlgmr.msrb.gmra.mxu2 %vm702_vm1, %v1277_v61  ;;  %1259 = vmatmul.msk.bf16.vlgmr.msrb.gmra.mxu3 %vm702_vm1, %v1277_v61 }
 0x2ab   : > { %v894_v2 = vld [vmem:[#allocation4 + $0x8] sm:$0xff] }
 0x2ac   : > { %933 = vst [vmem:[#allocation1 + $0x20] ss:$4 sm:$0xff] %v894_v2 }
 0x2b3   : > { %v938_v3 = vld.sshfl [vmem:[#allocation1 + $0x20] sm:$0xff pattern:$0x73625140]  ;;  %v939_v4 = vld.sshfl [vmem:[#allocation1 + $0x28] sm:$0xff pattern:$0x73625140] }
 0x2b4   : > { %v956_v5 = vsel %vm658_vm15, %v938_v3, 0  ;;  %v958_v6 = vsel %vm658_vm15, %v939_v4, 0  ;;  %v940_v7 = vld.sshfl [vmem:[#allocation1 + $0x30] sm:$0xff pattern:$0x73625140] }
 0x2b5   : > { %1047 = vmatpush.bf16.msrb.mxu0 %v956_v5  ;;  %1066 = vmatpush.bf16.msrb.mxu1 %v958_v6  ;;  %v960_v9 = vsel %vm658_vm15, %v940_v7, 0  ;;  %v941_v10 = vld.sshfl [vmem:[#allocation1 + $0x38] sm:$0xff pattern:$0x73625140] }
 0x2b6   : > { %1085 = vmatpush.bf16.msra.mxu2 %v960_v9  ;;  %v962_v11 = vsel %vm658_vm15, %v941_v10, 0 }
 0x2b7   : > { %1104 = vmatpush.bf16.msra.mxu3 %v962_v11 }
 0x2b8   : > { %1254 = vmatmul.msk.bf16.gmra.mxu0 %vm702_vm1, %v1278_v8  ;;  %1256 = vmatmul.msk.bf16.gmra.mxu1 %vm702_vm1, %v1278_v8 }
 0x2ba   : > { %1258 = vmatmul.msk.bf16.gmra.mxu2 %vm702_vm1, %v1278_v8  ;;  %1260 = vmatmul.msk.bf16.gmra.mxu3 %vm702_vm1, %v1278_v8 }
 0x2c8   : > { %1261 = vmatmul.msk.bf16.vlgmr.msrb.gmra.mxu0 %vm702_vm1, %v1277_v61  ;;  %1263 = vmatmul.msk.bf16.vlgmr.msrb.gmra.mxu1 %vm702_vm1, %v1277_v61 }
 0x2ca   : > { %1265 = vmatmul.msk.bf16.vlgmr.msra.gmra.mxu2 %vm702_vm1, %v1277_v61  ;;  %1267 = vmatmul.msk.bf16.vlgmr.msra.gmra.mxu3 %vm702_vm1, %v1277_v61 }
 0x2d8   : > { %1262 = vmatmul.msk.bf16.gmra.mxu0 %vm702_vm1, %v1278_v8  ;;  %1264 = vmatmul.msk.bf16.gmra.mxu1 %vm702_vm1, %v1278_v8 }
 0x2da   : > { %1266 = vmatmul.msk.bf16.gmra.mxu2 %vm702_vm1, %v1278_v8  ;;  %1268 = vmatmul.msk.bf16.gmra.mxu3 %vm702_vm1, %v1278_v8 }
 0x325   : > { %v973_v13 = vpop.f32.mrf.mxu0  ;;  %v992_v14 = vpop.f32.mrf.mxu1 }
 0x326   : > { %v974_v15 = vadd.f32 %v973_v13, %v902_v12  ;;  %v993_v16 = vadd.f32 %v992_v14, %v902_v12 }
 0x328   : > { %v1116_v17 = vpack.c.bf16 %v993_v16, %v974_v15 }
 0x32a   : > { %1132 = vst [vmem:[%s1522_s8] sm:$0xff] %v1116_v17 }
 0x32d   : > { %v1011_v19 = vpop.f32.mrf.mxu2  ;;  %v1030_v20 = vpop.f32.mrf.mxu3 }
 0x32e   : > { %v1012_v21 = vadd.f32 %v1011_v19, %v902_v12  ;;  %v1031_v22 = vadd.f32 %v1030_v20, %v902_v12  ;;  %v975_v23 = vpop.f32.mrf.mxu0  ;;  %v994_v24 = vpop.f32.mrf.mxu1 }
 0x32f   : > { %v976_v25 = vadd.f32 %v975_v23, %v1525_v18  ;;  %v995_v26 = vadd.f32 %v994_v24, %v1525_v18 }
 0x330   : > { %v1117_v27 = vpack.c.bf16 %v1031_v22, %v1012_v21 }
 0x331   : > { %v1120_v28 = vpack.c.bf16 %v995_v26, %v976_v25 }
 0x332   : > { %1133 = vst [vmem:[%s1522_s8 + $0x8] sm:$0xff] %v1117_v27 }
 0x333   : > { %1136 = vst [vmem:[%s1522_s8 + $0x20] sm:$0xff] %v1120_v28 }
 0x335   : > { %v1013_v30 = vpop.f32.mrf.mxu2  ;;  %v1032_v31 = vpop.f32.mrf.mxu3 }
 0x336   : > { %v1014_v32 = vadd.f32 %v1013_v30, %v1525_v18  ;;  %v1033_v33 = vadd.f32 %v1032_v31, %v1525_v18  ;;  %v978_v34 = vpop.f32.mrf.mxu0  ;;  %v997_v35 = vpop.f32.mrf.mxu1 }
 0x337   : > { %v979_v36 = vadd.f32 %v978_v34, %v1531_v29  ;;  %v998_v37 = vadd.f32 %v997_v35, %v1531_v29 }
 0x338   : > { %v1121_v38 = vpack.c.bf16 %v1033_v33, %v1014_v32 }
 0x339   : > { %v1124_v39 = vpack.c.bf16 %v998_v37, %v979_v36 }
 0x33a   : > { %1137 = vst [vmem:[%s1522_s8 + $0x28] sm:$0xff] %v1121_v38 }
 0x33b   : > { %1140 = vst [vmem:[%s1522_s8 + $0x40] sm:$0xff] %v1124_v39 }
 0x33d   : > { %v1016_v41 = vpop.f32.mrf.mxu2  ;;  %v1035_v42 = vpop.f32.mrf.mxu3 }
 0x33e   : > { %v1017_v43 = vadd.f32 %v1016_v41, %v1531_v29  ;;  %v1036_v45 = vadd.f32 %v1035_v42, %v1531_v29  ;;  %v980_v46 = vpop.f32.mrf.mxu0  ;;  %v999_v44 = vpop.f32.mrf.mxu1 }
 0x33f   : > { %v981_v47 = vadd.f32 %v980_v46, %v1539_v40  ;;  %v1000_v48 = vadd.f32 %v999_v44, %v1539_v40 }
 0x340   : > { %v1125_v49 = vpack.c.bf16 %v1036_v45, %v1017_v43 }
 0x341   : > { %v1128_v50 = vpack.c.bf16 %v1000_v48, %v981_v47 }
 0x342   : > { %1141 = vst [vmem:[%s1522_s8 + $0x48] sm:$0xff] %v1125_v49 }
 0x343   : > { %1144 = vst [vmem:[%s1522_s8 + $0x60] sm:$0xff] %v1128_v50 }
 0x345   : > { %v1018_v51 = vpop.f32.mrf.mxu2  ;;  %v1037_v52 = vpop.f32.mrf.mxu3 }
 0x346   : > { %v1019_v53 = vadd.f32 %v1018_v51, %v1539_v40  ;;  %v1038_v54 = vadd.f32 %v1037_v52, %v1539_v40  ;;  %v1049_v55 = vpop.f32.mrf.mxu0  ;;  %v1068_v56 = vpop.f32.mrf.mxu1 }
 0x347   : > { %v1050_v57 = vadd.f32 %v1049_v55, %v902_v12  ;;  %v1069_v58 = vadd.f32 %v1068_v56, %v902_v12 }
 0x348   : > { %v1129_v59 = vpack.c.bf16 %v1038_v54, %v1019_v53 }
 0x349   : > { %v1118_v60 = vpack.c.bf16 %v1069_v58, %v1050_v57 }
 0x34a   : > { %1145 = vst [vmem:[%s1522_s8 + $0x68] sm:$0xff] %v1129_v59 }
 0x34b   : > { %1134 = vst [vmem:[%s1522_s8 + $0x10] sm:$0xff] %v1118_v60 }
 0x34d   : > { %v1087_v61 = vpop.f32.mrf.mxu2  ;;  %v1106_v62 = vpop.f32.mrf.mxu3 }
 0x34e   : > { %v1088_v63 = vadd.f32 %v1087_v61, %v902_v12  ;;  %v1107_v0 = vadd.f32 %v1106_v62, %v902_v12  ;;  %v1051_v1 = vpop.f32.mrf.mxu0  ;;  %v1070_v2 = vpop.f32.mrf.mxu1 }
 0x34f   : > { %v1052_v3 = vadd.f32 %v1051_v1, %v1525_v18  ;;  %v1071_v4 = vadd.f32 %v1070_v2, %v1525_v18 }
 0x350   : > { %v1119_v5 = vpack.c.bf16 %v1107_v0, %v1088_v63 }
 0x351   : > { %v1122_v6 = vpack.c.bf16 %v1071_v4, %v1052_v3 }
 0x352   : > { %1135 = vst [vmem:[%s1522_s8 + $0x18] sm:$0xff] %v1119_v5 }
 0x353   : > { %1138 = vst [vmem:[%s1522_s8 + $0x30] sm:$0xff] %v1122_v6 }
 0x355   : > { %v1089_v7 = vpop.f32.mrf.mxu2  ;;  %v1108_v8 = vpop.f32.mrf.mxu3 }
 0x356   : > { %v1090_v9 = vadd.f32 %v1089_v7, %v1525_v18  ;;  %v1109_v10 = vadd.f32 %v1108_v8, %v1525_v18  ;;  %v1054_v11 = vpop.f32.mrf.mxu0  ;;  %v1073_v12 = vpop.f32.mrf.mxu1 }
 0x357   : > { %v1055_v13 = vadd.f32 %v1054_v11, %v1531_v29  ;;  %v1074_v14 = vadd.f32 %v1073_v12, %v1531_v29 }
 0x358   : > { %v1123_v15 = vpack.c.bf16 %v1109_v10, %v1090_v9 }
 0x359   : > { %v1126_v16 = vpack.c.bf16 %v1074_v14, %v1055_v13 }
 0x35a   : > { %1139 = vst [vmem:[%s1522_s8 + $0x38] sm:$0xff] %v1123_v15 }
 0x35b   : > { %1142 = vst [vmem:[%s1522_s8 + $0x50] sm:$0xff] %v1126_v16 }
 0x35d   : > { %v1092_v17 = vpop.f32.mrf.mxu2  ;;  %v1111_v19 = vpop.f32.mrf.mxu3 }
 0x35e   : > { %v1093_v20 = vadd.f32 %v1092_v17, %v1531_v29  ;;  %v1112_v21 = vadd.f32 %v1111_v19, %v1531_v29  ;;  %v1056_v18 = vpop.f32.mrf.mxu0  ;;  %v1075_v22 = vpop.f32.mrf.mxu1 }
 0x35f   : > { %v1057_v23 = vadd.f32 %v1056_v18, %v1539_v40  ;;  %v1076_v24 = vadd.f32 %v1075_v22, %v1539_v40 }
 0x360   : > { %v1127_v25 = vpack.c.bf16 %v1112_v21, %v1093_v20 }
 0x361   : > { %v1130_v26 = vpack.c.bf16 %v1076_v24, %v1057_v23 }
 0x362   : > { %1143 = vst [vmem:[%s1522_s8 + $0x58] sm:$0xff] %v1127_v25 }
 0x363   : > { %1146 = vst [vmem:[%s1522_s8 + $0x70] sm:$0xff] %v1130_v26 }
 0x365   : > { %v1094_v27 = vpop.f32.mrf.mxu2  ;;  %v1113_v28 = vpop.f32.mrf.mxu3 }
 0x366   : > { %v1095_v30 = vadd.f32 %v1094_v27, %v1539_v40  ;;  %v1114_v31 = vadd.f32 %v1113_v28, %v1539_v40 }
 0x368   : > { %v1131_v32 = vpack.c.bf16 %v1114_v31, %v1095_v30 }
 0x36a   : > { %1147 = vst [vmem:[%s1522_s8 + $0x78] sm:$0xff] %v1131_v32 }
 0x36b PF: > { %s17_s24 = sadd.s32 1, %s1306_s24  }
 0x36c   : > { %p14_p4 = scmp.ge.s32.totalorder %s17_s24, 4  }
 0x36e   :  { %16 = sbr.rel (!%p14_p4) target bundleno = 1 (0x1), region = 90 }

</bundles_post_ra>
